<compile_context>
chip_gen: v7x
topology: tpu7x:2x2x1
jax: 0.10.0
libtpu: 0.0.40
codegen_flags: <defaults>
</compile_context>

<pallas_src>
import functools

import jax
import jax.numpy as jnp
from jax.experimental import pallas as pl
from jax.experimental.pallas import tpu as pltpu


def _hrr_nsvq_kernel(x_ref, cb_ref, rnd_ref, o_ref, *, eps, threshold):
    # x_ref / rnd_ref / o_ref blocks: (TB, S, D); cb_ref block: (I, D)
    TB, S, D = x_ref.shape

    x3 = x_ref[...]        # (TB, S, D) f32
    rnd = rnd_ref[...]     # (TB, S, D) f32
    cb = cb_ref[...]       # (I, D)     f32

    # Flatten batch*seq so the MXU sees a tall M (layout-free when S % 8 == 0).
    x2 = x3.reshape(TB * S, D)

    # Row-wise L2 norm over the feature dim; scale the similarities AFTER the
    # matmul instead of materializing a normalized copy of x (same math).
    x_sq = jnp.sum(x2 * x2, axis=-1, keepdims=True)                # (TB*S, 1)
    inv_norm = 1.0 / (jnp.sqrt(x_sq) + eps)                        # exact (eps-guarded)

    # x @ cb^T via dot_general contracting the last dims of both operands
    # (no explicit codebook transpose).
    sims = jax.lax.dot_general(
        x2, cb, (((1,), (1,)), ((), ())),
        preferred_element_type=jnp.float32) * inv_norm             # (TB*S, I)

    # Multi-label thresholding, then superpose the selected codebook entries.
    is_similar = (sims > threshold).astype(jnp.float32)            # (TB*S, I)
    best = jnp.dot(is_similar, cb,
                   preferred_element_type=jnp.float32)             # (TB*S, D)

    # Sequence-axis (torch dim=1) reductions with keepdim -> (TB, 1, D).
    diff = (x2 - best).reshape(TB, S, D)
    norm_best = jnp.sqrt(jnp.sum(diff * diff, axis=1, keepdims=True))   # (TB, 1, D)
    norm_rnd = jnp.sqrt(jnp.sum(rnd * rnd, axis=1, keepdims=True))      # (TB, 1, D)

    # Form the per-(batch, feature) ratio once, then a single broadcast multiply.
    ratio = norm_best / (norm_rnd + eps)                                 # (TB, 1, D)
    o_ref[...] = (x3 + ratio * rnd).astype(o_ref.dtype)


def _pick_batch_block(B, S, D, itemsize, *, max_block_bytes=4 << 20, target_rows=128):
    """Largest divisor TB of B whose (TB, S, D) block stays under `max_block_bytes`
    (keeps double-buffered streams well inside v7x's 64 MiB VMEM). Once the MXU
    already sees >= `target_rows` rows, stop growing if it would collapse the
    parallel grid below 2 steps (keeps both v7x TensorCores busy)."""
    best = 1
    for tb in range(1, B + 1):
        if B % tb:
            continue
        if tb * S * D * itemsize > max_block_bytes:
            break
        if best * S >= target_rows and B // tb < 2:
            break
        best = tb
    return best


def hrr_nsvq_multilabel(x, codebooks, random_vector, *, eps=1e-12, threshold=0.3,
                        batch_block=None):
    """x, random_vector: (B, S, D) float32; codebooks: (I, D) float32."""
    B, S, D = x.shape
    I, Dc = codebooks.shape
    assert Dc == D
    assert random_vector.shape == x.shape

    itemsize = jnp.dtype(x.dtype).itemsize
    TB = batch_block if batch_block is not None else _pick_batch_block(B, S, D, itemsize)
    assert B % TB == 0, "batch_block must divide the batch dimension"
    grid = (B // TB,)

    # VMEM budget sized to the actual footprint: 3 double-buffered (TB,S,D)
    # streams + resident codebook + the (TB*S, I) sims temporary + headroom.
    def _lane_pad(n):
        return ((n + 127) // 128) * 128

    block_bytes = TB * S * _lane_pad(D) * 4
    cb_bytes = I * _lane_pad(D) * 4
    sims_bytes = TB * S * _lane_pad(I) * 4
    vmem_limit = 2 * (3 * block_bytes + cb_bytes) + sims_bytes + 4 * block_bytes + (4 << 20)
    vmem_limit = int(min(max(vmem_limit, 16 << 20), 64 << 20))

    kernel = functools.partial(_hrr_nsvq_kernel, eps=eps, threshold=threshold)

    return pl.pallas_call(
        kernel,
        out_shape=jax.ShapeDtypeStruct((B, S, D), x.dtype),
        grid_spec=pltpu.PrefetchScalarGridSpec(
            num_scalar_prefetch=0,
            grid=grid,
            in_specs=[
                pl.BlockSpec((TB, S, D), lambda b: (b, 0, 0)),   # x
                pl.BlockSpec((I, D), lambda b: (0, 0)),          # codebooks (resident)
                pl.BlockSpec((TB, S, D), lambda b: (b, 0, 0)),   # random_vector
            ],
            out_specs=pl.BlockSpec((TB, S, D), lambda b: (b, 0, 0)),
        ),
        compiler_params=pltpu.CompilerParams(
            dimension_semantics=("parallel",),
            vmem_limit_bytes=vmem_limit,
        ),
    )(x, codebooks, random_vector)


def _reference(x, codebooks, random_vector, eps=1e-12, threshold=0.3):
    x_norm = jnp.linalg.norm(x, axis=-1, keepdims=True)
    sims = jnp.matmul(x / (x_norm + eps), codebooks.T)
    is_similar = (sims > threshold).astype(jnp.float32)
    best = jnp.einsum('id,bsi->bsd', codebooks, is_similar)
    norm_best = jnp.sqrt(jnp.sum((x - best) ** 2, axis=1, keepdims=True))
    norm_rnd = jnp.sqrt(jnp.sum(random_vector ** 2, axis=1, keepdims=True))
    vq_error = norm_best / (norm_rnd + eps) * random_vector
    return x + vq_error


if __name__ == "__main__":
    # Small shapes consistent with the module: (B, S, D) input, (I, D) codebook.
    B, S, D = 2, 8, 32
    num_embeddings = 16

    key = jax.random.PRNGKey(0)
    k_cb, k_x, k_rnd = jax.random.split(key, 3)

    # Deterministic codebook init (stand-in for hrr.init), then unit-normalize
    # exactly as the module's __init__ does.
    # TODO(synk): hrr.init draws HRR-structured vectors; plain normal used here.
    codebooks = jax.random.normal(k_cb, (num_embeddings, D), dtype=jnp.float32)
    codebooks = codebooks / jnp.linalg.norm(codebooks, axis=-1, keepdims=True)

    x = jax.random.normal(k_x, (B, S, D), dtype=jnp.float32)
    random_vector = jax.random.normal(k_rnd, (B, S, D), dtype=jnp.float32)

    out = hrr_nsvq_multilabel(x, codebooks, random_vector)
    out = jax.block_until_ready(out)

    ref = _reference(x, codebooks, random_vector)
    assert out.shape == (B, S, D)
    assert jnp.allclose(out, ref, atol=1e-5, rtol=1e-5), "mismatch vs reference"

    print("KERNEL_OK")
</pallas_src>

<mosaic_0001>
module attributes {stable_mosaic.version = 11 : i64} {
  func.func @_hrr_nsvq_kernel(%arg0: i32, %arg1: memref<2x8x32xf32, #tpu.memory_space<vmem>>, %arg2: memref<16x32xf32, #tpu.memory_space<vmem>>, %arg3: memref<2x8x32xf32, #tpu.memory_space<vmem>>, %arg4: memref<2x8x32xf32, #tpu.memory_space<vmem>>) attributes {dimension_semantics = [#tpu.dimension_semantics<parallel>], iteration_bounds = array<i64: 1>, scalar_prefetch = 0 : i64, scratch_operands = 0 : i64, tpu.core_type = #tpu.core_type<tc>, window_params = [{transform_indices = @transform_0, window_bounds = array<i64: 2, 8, 32>}, {pipeline_mode = #tpu.pipeline_mode<synchronous>, transform_indices = @transform_1, window_bounds = array<i64: 16, 32>}, {transform_indices = @transform_2, window_bounds = array<i64: 2, 8, 32>}, {transform_indices = @transform_3, window_bounds = array<i64: 2, 8, 32>}]} {
    %c0 = arith.constant 0 : index
    %c0_0 = arith.constant 0 : index
    %c0_1 = arith.constant 0 : index
    %0 = vector.load %arg1[%c0, %c0_0, %c0_1] : memref<2x8x32xf32, #tpu.memory_space<vmem>>, vector<2x8x32xf32>
    %c0_2 = arith.constant 0 : index
    %c0_3 = arith.constant 0 : index
    %c0_4 = arith.constant 0 : index
    %1 = vector.load %arg3[%c0_2, %c0_3, %c0_4] : memref<2x8x32xf32, #tpu.memory_space<vmem>>, vector<2x8x32xf32>
    %c0_5 = arith.constant 0 : index
    %c0_6 = arith.constant 0 : index
    %2 = vector.load %arg2[%c0_5, %c0_6] : memref<16x32xf32, #tpu.memory_space<vmem>>, vector<16x32xf32>
    %3 = vector.shape_cast %0 : vector<2x8x32xf32> to vector<16x32xf32>
    %4 = arith.mulf %3, %3 : vector<16x32xf32>
    %cst = arith.constant dense<0.000000e+00> : vector<16xf32>
    %5 = vector.multi_reduction <add>, %4, %cst [1] : vector<16x32xf32> to vector<16xf32>
    %6 = vector.shape_cast %5 : vector<16xf32> to vector<16x1xf32>
    %7 = math.sqrt %6 : vector<16x1xf32>
    %cst_7 = arith.constant 9.99999996E-13 : f32
    %8 = vector.broadcast %cst_7 : f32 to vector<16x1xf32>
    %9 = arith.addf %7, %8 : vector<16x1xf32>
    %cst_8 = arith.constant 1.000000e+00 : f32
    %10 = vector.broadcast %cst_8 : f32 to vector<16x1xf32>
    %11 = arith.divf %10, %9 : vector<16x1xf32>
    %cst_9 = arith.constant dense<0.000000e+00> : vector<16x16xf32>
    %12 = tpu.matmul %3, %2, %cst_9 {dimension_numbers = #tpu.dot_dimension_numbers<[1], [1], [0], [0], [0, 0, 1, 0], [], []>} : vector<16x32xf32>, vector<16x32xf32>, vector<16x16xf32> -> vector<16x16xf32>
    %13 = vector.broadcast %11 : vector<16x1xf32> to vector<16x16xf32>
    %14 = arith.mulf %12, %13 : vector<16x16xf32>
    %cst_10 = arith.constant 3.000000e-01 : f32
    %15 = vector.broadcast %cst_10 : f32 to vector<16x16xf32>
    %16 = arith.cmpf ogt, %14, %15 : vector<16x16xf32>
    %17 = arith.extui %16 : vector<16x16xi1> to vector<16x16xi32>
    %18 = arith.sitofp %17 : vector<16x16xi32> to vector<16x16xf32>
    %cst_11 = arith.constant dense<0.000000e+00> : vector<16x32xf32>
    %19 = tpu.matmul %18, %2, %cst_11 {dimension_numbers = #tpu.dot_dimension_numbers<[1], [0], [0], [1], [0, 0, 1, 1], [], []>} : vector<16x16xf32>, vector<16x32xf32>, vector<16x32xf32> -> vector<16x32xf32>
    %20 = arith.subf %3, %19 : vector<16x32xf32>
    %21 = vector.shape_cast %20 : vector<16x32xf32> to vector<2x8x32xf32>
    %22 = arith.mulf %21, %21 : vector<2x8x32xf32>
    %cst_12 = arith.constant dense<0.000000e+00> : vector<2x32xf32>
    %23 = vector.multi_reduction <add>, %22, %cst_12 [1] : vector<2x8x32xf32> to vector<2x32xf32>
    %24 = vector.shape_cast %23 : vector<2x32xf32> to vector<2x1x32xf32>
    %25 = math.sqrt %24 : vector<2x1x32xf32>
    %26 = arith.mulf %1, %1 : vector<2x8x32xf32>
    %cst_13 = arith.constant dense<0.000000e+00> : vector<2x32xf32>
    %27 = vector.multi_reduction <add>, %26, %cst_13 [1] : vector<2x8x32xf32> to vector<2x32xf32>
    %28 = vector.shape_cast %27 : vector<2x32xf32> to vector<2x1x32xf32>
    %29 = math.sqrt %28 : vector<2x1x32xf32>
    %cst_14 = arith.constant 9.99999996E-13 : f32
    %30 = vector.broadcast %cst_14 : f32 to vector<2x1x32xf32>
    %31 = arith.addf %29, %30 : vector<2x1x32xf32>
    %32 = arith.divf %25, %31 : vector<2x1x32xf32>
    %33 = vector.broadcast %32 : vector<2x1x32xf32> to vector<2x8x32xf32>
    %34 = arith.mulf %33, %1 : vector<2x8x32xf32>
    %35 = arith.addf %0, %34 : vector<2x8x32xf32>
    %c0_15 = arith.constant 0 : index
    %c0_16 = arith.constant 0 : index
    %c0_17 = arith.constant 0 : index
    %36 = vector.load %arg4[%c0_15, %c0_16, %c0_17] : memref<2x8x32xf32, #tpu.memory_space<vmem>>, vector<2x8x32xf32>
    tpu.vector_store %arg4[%c0_15, %c0_16, %c0_17], %35 {strides = array<i32>} : memref<2x8x32xf32, #tpu.memory_space<vmem>>, vector<2x8x32xf32>,
    return
  }
  func.func @transform_0(%arg0: i32) -> (i32, i32, i32) {
    %c0_i32 = arith.constant 0 : i32
    %c0_i32_0 = arith.constant 0 : i32
    %c0_i32_1 = arith.constant 0 : i32
    return %arg0, %c0_i32, %c0_i32_0 : i32, i32, i32
  }
  func.func @transform_1(%arg0: i32) -> (i32, i32) {
    %c0_i32 = arith.constant 0 : i32
    %c0_i32_0 = arith.constant 0 : i32
    %c0_i32_1 = arith.constant 0 : i32
    return %c0_i32, %c0_i32_0 : i32, i32
  }
  func.func @transform_2(%arg0: i32) -> (i32, i32, i32) {
    %c0_i32 = arith.constant 0 : i32
    %c0_i32_0 = arith.constant 0 : i32
    %c0_i32_1 = arith.constant 0 : i32
    return %arg0, %c0_i32, %c0_i32_0 : i32, i32, i32
  }
  func.func @transform_3(%arg0: i32) -> (i32, i32, i32) {
    %c0_i32 = arith.constant 0 : i32
    %c0_i32_0 = arith.constant 0 : i32
    %c0_i32_1 = arith.constant 0 : i32
    return %arg0, %c0_i32, %c0_i32_0 : i32, i32, i32
  }
}

</mosaic_0001>

<bundles_post_ra>
// kernel: tpu_custom_call.1
= control target key start
LH: loop header
LB: loop body
LE: loop exit
PB: predicated region body
PF: predicated region fallthrough
CT: control target
= control target key end

     0   :  { %8 = vsyncpa [#allocation3], 0  ;;  %s651_s0 = inlined_call_operand.hbm [shape: f32[2,8,32], index: 0, kind: input, shape index: {}]   ;;  %s652_s1 = inlined_call_operand.hbm [shape: f32[16,32], index: 1, kind: input, shape index: {}]   ;;  %s653_s2 = inlined_call_operand.hbm [shape: f32[2,8,32], index: 2, kind: input, shape index: {}]   ;;  %s654_s3 = inlined_call_operand.hbm [shape: f32[2,8,32], index: 3, kind: output, shape index: {}]  }
   0x1   :  { %9 = vsyncpa [#allocation6], 0 }
   0x2   :  { %10 = vsyncpa [#allocation4], 0  ;;  %s521_s12 = smov [#allocation5]   ;;  %s522_s14 = smov [#allocation2]  }
   0x3   :  { %s28_s13 = sshll.u32 %s521_s12, 4  ;;  %s16_s15 = sshll.u32 %s522_s14, 4  ;;  %s29_s13 = int_to_ptr.vmem [resolvable:$true] %s28_s13  ;;  %s548_s15 = int_to_ptr.vmem [resolvable:$true] %s16_s15 }
   0x4   :  { %s427_s18 = scalar_lea.hbm %s652_s1, 256 }
   0x5   :  { %p428_p0 = scmp.ne.s32.totalorder %s652_s1, %s427_s18  ;;  %p431_p1 = scmp.lt.u32.totalorder %s427_s18, %s652_s1 }
   0x7   :  { %p433_p2 = pnand %p431_p1, %p428_p0 }
   0x9   :  { %436 = shalt.err (!%p433_p2)
}
   0xa   :  { %s437_s23 = scalar_lea.vmem %s29_s13, 256  ;;  %p442_p4 = scmp.lt.s32.totalorder %s29_s13, %s29_s13 }
   0xb   :  { %p438_p3 = scmp.ne.s32.totalorder %s29_s13, %s437_s23  ;;  %p443_p5 = scmp.lt.s32.totalorder %s437_s23, %s437_s23 }
   0xd   :  { %p444_p6 = por %p443_p5, %p442_p4 }
   0xf   :  { %p445_p7 = pnand %p444_p6, %p438_p3 }
  0x11   :  { %448 = shalt.err (!%p445_p7)
}
  0x12   :  { %s523_s24 = smov 128   ;;  %s524_s25 = smov 8  }
  0x13   :  { %34 = dma.hbm_to_vmem [thread:$0]  %s652_s1, 256, %s29_s13, [#allocation6], %s523_s24, %s523_s24, %s524_s25  }
  0x14   :  { %s449_s30 = scalar_lea.hbm %s651_s0, 256 }
  0x15   :  { %p450_p8 = scmp.ne.s32.totalorder %s651_s0, %s449_s30  ;;  %p453_p9 = scmp.lt.u32.totalorder %s449_s30, %s651_s0 }
  0x17   :  { %p455_p10 = pnand %p453_p9, %p450_p8 }
  0x19   :  { %458 = shalt.err (!%p455_p10)
}
  0x1a   :  { %s459_s8 = scalar_lea.vmem %s548_s15, 256  ;;  %p464_p12 = scmp.lt.s32.totalorder %s548_s15, %s548_s15 }
  0x1b   :  { %p460_p11 = scmp.ne.s32.totalorder %s548_s15, %s459_s8  ;;  %p465_p13 = scmp.lt.s32.totalorder %s459_s8, %s459_s8 }
  0x1d   :  { %p466_p0 = por %p465_p13, %p464_p12 }
  0x1f   :  { %p467_p1 = pnand %p466_p0, %p460_p11 }
  0x21   :  { %470 = shalt.err (!%p467_p1)
}
  0x22   :  { %22 = dma.hbm_to_vmem [thread:$0]  %s651_s0, 256, %s548_s15, [#allocation3], %s523_s24, %s523_s24, %s524_s25  }
  0x23   :  { %s525_s10 = smov [#allocation7]   ;;  %s471_s14 = scalar_lea.hbm %s653_s2, 256 }
  0x24   :  { %s40_s11 = sshll.u32 %s525_s10, 4  ;;  %p472_p2 = scmp.ne.s32.totalorder %s653_s2, %s471_s14  ;;  %s41_s11 = int_to_ptr.vmem [resolvable:$true] %s40_s11 }
  0x25   :  { %p475_p3 = scmp.lt.u32.totalorder %s471_s14, %s653_s2 }
  0x27   :  { %p477_p4 = pnand %p475_p3, %p472_p2 }
  0x29   :  { %480 = shalt.err (!%p477_p4)
}
  0x2a   :  { %s481_s20 = scalar_lea.vmem %s41_s11, 256  ;;  %p486_p6 = scmp.lt.s32.totalorder %s41_s11, %s41_s11 }
  0x2b   :  { %p482_p5 = scmp.ne.s32.totalorder %s41_s11, %s481_s20  ;;  %p487_p7 = scmp.lt.s32.totalorder %s481_s20, %s481_s20 }
  0x2d   :  { %p488_p8 = por %p487_p7, %p486_p6 }
  0x2f   :  { %p489_p9 = pnand %p488_p8, %p482_p5 }
  0x31   :  { %492 = shalt.err (!%p489_p9)
}
  0x32   :  { %46 = dma.hbm_to_vmem [thread:$0]  %s653_s2, 256, %s41_s11, [#allocation6], %s523_s24, %s523_s24, %s524_s25  }
  0x33   :  { %515 = dma.done.wait [#allocation3], 256  }
  0x34   :  { %516 = vsyncadd [#allocation3], 4294967040 }
  0x35   :  { %517 = dma.done.wait [#allocation6], 512  }
  0x36   :  { %518 = vsyncadd [#allocation6], 4294966784  ;;  %vm64_vm0 = vcmask 261120   ;;  %v60_v0 = vld [vmem:[#allocation5] sm:$0xff]  ;;  %v61_v1 = vld [vmem:[#allocation5 + $0x8] sm:$0xff]  ;;  %vm186_vm7 = vcmask 130048  }
  0x37   :  { %vm391_vm1 = vmpackc.low %vm64_vm0, %vm64_vm0  ;;  %v602_v2 = vld [vmem:[#allocation2] sm:$0xff]  ;;  %v390_v3 = vpack.c.bf16 %v61_v1, %v60_v0  ;;  %v606_v4 = vld [vmem:[#allocation2 + $0x8] sm:$0xff]  ;;  %v526_v29 = vmov 0.0   ;;  %s527_s2 = smov [#allocation8]  }
  0x38   :  { %380 = vmatprep.mubr.msk.f32.mxu0 %vm64_vm0, %v602_v2  ;;  %v62_v5 = vmul.f32 %v602_v2, %v602_v2  ;;  %v63_v6 = vmul.f32 %v606_v4, %v606_v4  ;;  %v616_v32 = vld [vmem:[#allocation7 + $0x8] sm:$0xff]  ;;  %v618_v33 = vld [vmem:[#allocation7] sm:$0xff]  ;;  %s347_s21 = sshll.u32 %s527_s2, 4  ;;  %s348_s21 = int_to_ptr.vmem [resolvable:$true] %s347_s21 }
  0x39   :  { %392 = vmatprep.subr.msk.bf16.mxu0 %vm391_vm1, %v390_v3  ;;  %397 = vmatprep.subr.bf16.mxu1 %v390_v3  ;;  %v301_v34 = vmul.f32 %v616_v32, %v616_v32  ;;  %v300_v35 = vmul.f32 %v618_v33, %v618_v33  ;;  %s493_s22 = scalar_lea.vmem %s348_s21, 256  ;;  %p498_p11 = scmp.lt.s32.totalorder %s348_s21, %s348_s21 }
  0x3a   :  { %v65_v7 = vsel %vm64_vm0, %v62_v5, 0.0  ;;  %395 = vmatpush3.bf16.xpose.msk.msra.mxu0 %vm391_vm1, %v390_v3  ;;  %v68_v8 = vsel %vm64_vm0, %v63_v6, 0.0  ;;  %399 = vmatpush3.bf16.msra.mxu1 %v390_v3  ;;  %p494_p10 = scmp.ne.s32.totalorder %s348_s21, %s493_s22  ;;  %p499_p12 = scmp.lt.s32.totalorder %s493_s22, %s493_s22 }
  0x3b   :  { %66 = vadd.xlane.f32.xlu0 %v65_v7  ;;  %v309_v36 = vsel %vm64_vm0, %v301_v34, 0.0  ;;  %v302_v37 = vsel %vm64_vm0, %v300_v35, 0.0 }
  0x3c   :  { %v310_v38 = vrot.slane %v309_v36, 4  ;;  %v303_v39 = vrot.slane %v302_v37, 4  ;;  %p500_p13 = por %p499_p12, %p498_p11 }
  0x3e   :  { %v311_v40 = vadd.f32 %v310_v38, %v309_v36  ;;  %v304_v41 = vadd.f32 %v303_v39, %v302_v37  ;;  %p501_p0 = pnand %p500_p13, %p494_p10 }
  0x3f   :  { %69 = vadd.xlane.f32.xlu0 %v68_v8 }
  0x40   :  { %v312_v42 = vrot.slane %v311_v40, 2  ;;  %v305_v43 = vrot.slane %v304_v41, 2 }
  0x41   :  { %381 = vmatmul.mubr.msk.f32.vlgmr.msra.gmra.mrb[0].mxu0 %vm64_vm0, %v606_v4 }
  0x42   :  { %v313_v44 = vadd.f32 %v312_v42, %v311_v40  ;;  %v306_v45 = vadd.f32 %v305_v43, %v304_v41 }
  0x44   :  { %v314_v46 = vrot.slane %v313_v44, 1  ;;  %v307_v47 = vrot.slane %v306_v45, 1 }
  0x46   :  { %v315_v48 = vadd.f32 %v314_v46, %v313_v44  ;;  %v308_v49 = vadd.f32 %v307_v47, %v306_v45 }
  0x48   :  { %vm325_vm9 = vcmp.eq.f32.partialorder %v315_v48, inf  ;;  %vm318_vm10 = vcmp.eq.f32.partialorder %v308_v49, inf  ;;  %v328_v3 = vand.u32 2147483648, %v315_v48  ;;  %v321_v6 = vand.u32 2147483648, %v308_v49 }
  0x49   :  { %vm327_vm11 = vcmp.eq.f32.partialorder %v315_v48, 0.0  ;;  %vm320_vm12 = vcmp.eq.f32.partialorder %v308_v49, 0.0 }
  0xc8   :  { %v67_v9 = vpop.xlane.xlu0 %66 }
  0xc9   :  { %vm73_vm3 = vcmp.eq.f32.partialorder %v67_v9, inf  ;;  %v76_v16 = vand.u32 2147483648, %v67_v9  ;;  %vm75_vm5 = vcmp.eq.f32.partialorder %v67_v9, 0.0 }
  0xcc   :  { %v70_v10 = vpop.xlane.xlu0 %69 }
  0xcd   :  { %407 = vrsqrt.f32 %v70_v10  ;;  %vm80_vm2 = vcmp.eq.f32.partialorder %v70_v10, inf  ;;  %v83_v15 = vand.u32 2147483648, %v70_v10  ;;  %vm82_vm4 = vcmp.eq.f32.partialorder %v70_v10, 0.0 }
  0xce   :  { %409 = vrsqrt.f32 %v67_v9 }
  0xd7   :  { %v408_v11 = vpop.eup %407 }
  0xd8   :  { %v410_v12 = vpop.eup %409  ;;  %v79_v13 = vmul.f32 %v408_v11, %v70_v10 }
  0xd9   :  { %v72_v14 = vmul.f32 %v410_v12, %v67_v9 }
  0xda   :  { %v81_v17 = vsel %vm80_vm2, %v70_v10, %v79_v13 }
  0xdb   :  { %v74_v18 = vsel %vm73_vm3, %v67_v9, %v72_v14  ;;  %v84_v19 = vsel %vm82_vm4, %v83_v15, %v81_v17 }
  0xdc   :  { %v77_v20 = vsel %vm75_vm5, %v76_v16, %v74_v18  ;;  %v86_v21 = vadd.f32 1e-12, %v84_v19 }
  0xdd   :  { %v85_v22 = vadd.f32 1e-12, %v77_v20 }
  0xde   :  { %411 = vrcp.f32 %v86_v21 }
  0xdf   :  { %413 = vrcp.f32 %v85_v22 }
  0xe0   :  { %415 = vrsqrt.f32 %v315_v48 }
  0xe1   :  { %417 = vrsqrt.f32 %v308_v49 }
  0xe8   :  { %v412_v23 = vpop.eup %411 }
  0xe9   :  { %v414_v25 = vpop.eup %413 }
  0xea   :  { %v416_v54 = vpop.eup %415 }
  0xeb   :  { %v418_v56 = vpop.eup %417  ;;  %v324_v61 = vmul.f32 %v416_v54, %v315_v48 }
  0xec   :  { %v317_v63 = vmul.f32 %v418_v56, %v308_v49 }
  0xed   :  { %v326_v7 = vsel %vm325_vm9, %v315_v48, %v324_v61 }
  0xee   :  { %v319_v9 = vsel %vm318_vm10, %v308_v49, %v317_v63  ;;  %v329_v12 = vsel %vm327_vm11, %v328_v3, %v326_v7 }
  0xef   :  { %v322_v14 = vsel %vm320_vm12, %v321_v6, %v319_v9  ;;  %v331_v17 = vadd.f32 1e-12, %v329_v12 }
  0xf0   :  { %v330_v19 = vadd.f32 1e-12, %v322_v14 }
 0x114   :  { %v382_v24 = vpop.f32.mrb[0].mxu0 }
 0x115   :  { %v179_v26 = vmul.f32 %v412_v23, %v382_v24  ;;  %v169_v27 = vpop.f32.mrb[1].mxu0 }
 0x116   :  { %v178_v28 = vmul.f32 %v414_v25, %v169_v27 }
 0x117   :  { %vm181_vm6 = vcmp.gt.f32.partialorder %v179_v26, 0.3 }
 0x118   :  { %vm180_vm8 = vcmp.gt.f32.partialorder %v178_v28, 0.3  ;;  %v365_v31 = vsel %vm181_vm6, 1.0, %v526_v29 }
 0x119   :  { %v364_v30 = vsel %vm180_vm8, 1.0, %v526_v29 }
 0x11a   :  { %387 = vmatprep.mubr.msk.f32.mxu1 %vm186_vm7, %v364_v30 }
 0x11b   :  { %388 = vmatmul.mubr.msk.f32.vlgmr.msra.gmra.mrb[0].mxu1 %vm186_vm7, %v365_v31 }
 0x1ee   :  { %v389_v50 = vpop.f32.mrb[0].mxu1 }
 0x1ef   :  { %v269_v51 = vsub.f32 %v606_v4, %v389_v50  ;;  %v259_v52 = vpop.f32.mrb[1].mxu1 }
 0x1f0   :  { %v268_v53 = vsub.f32 %v602_v2, %v259_v52 }
 0x1f1   :  { %v271_v55 = vmul.f32 %v269_v51, %v269_v51 }
 0x1f2   :  { %v270_v57 = vmul.f32 %v268_v53, %v268_v53 }
 0x1f3   :  { %v279_v58 = vsel %vm64_vm0, %v271_v55, 0.0 }
 0x1f4   :  { %v280_v59 = vrot.slane %v279_v58, 4  ;;  %v272_v60 = vsel %vm64_vm0, %v270_v57, 0.0 }
 0x1f5   :  { %v273_v62 = vrot.slane %v272_v60, 4 }
 0x1f6   :  { %v281_v0 = vadd.f32 %v280_v59, %v279_v58 }
 0x1f7   :  { %v274_v1 = vadd.f32 %v273_v62, %v272_v60 }
 0x1f8   :  { %v282_v5 = vrot.slane %v281_v0, 2 }
 0x1f9   :  { %v275_v8 = vrot.slane %v274_v1, 2 }
 0x1fa   :  { %v283_v10 = vadd.f32 %v282_v5, %v281_v0 }
 0x1fb   :  { %v276_v11 = vadd.f32 %v275_v8, %v274_v1 }
 0x1fc   :  { %v284_v13 = vrot.slane %v283_v10, 1 }
 0x1fd   :  { %v277_v15 = vrot.slane %v276_v11, 1 }
 0x1fe   :  { %v285_v16 = vadd.f32 %v284_v13, %v283_v10 }
 0x1ff   :  { %v278_v18 = vadd.f32 %v277_v15, %v276_v11 }
 0x200   :  { %419 = vrsqrt.f32 %v285_v16  ;;  %vm295_vm13 = vcmp.eq.f32.partialorder %v285_v16, inf  ;;  %v298_v25 = vand.u32 2147483648, %v285_v16  ;;  %vm297_vm15 = vcmp.eq.f32.partialorder %v285_v16, 0.0 }
 0x201   :  { %421 = vrsqrt.f32 %v278_v18  ;;  %vm288_vm14 = vcmp.eq.f32.partialorder %v278_v18, inf  ;;  %v291_v27 = vand.u32 2147483648, %v278_v18  ;;  %vm290_vm1 = vcmp.eq.f32.partialorder %v278_v18, 0.0 }
 0x202   :  { %423 = vrcp.f32 %v331_v17 }
 0x203   :  { %425 = vrcp.f32 %v330_v19 }
 0x20a   :  { %v420_v20 = vpop.eup %419 }
 0x20b   :  { %v422_v21 = vpop.eup %421  ;;  %v294_v22 = vmul.f32 %v420_v20, %v285_v16 }
 0x20c   :  { %v424_v23 = vpop.eup %423  ;;  %v287_v24 = vmul.f32 %v422_v21, %v278_v18 }
 0x20d   :  { %v426_v26 = vpop.eup %425  ;;  %v296_v28 = vsel %vm295_vm13, %v285_v16, %v294_v22 }
 0x20e   :  { %v289_v29 = vsel %vm288_vm14, %v278_v18, %v287_v24  ;;  %v299_v30 = vsel %vm297_vm15, %v298_v25, %v296_v28 }
 0x20f   :  { %v292_v31 = vsel %vm290_vm1, %v291_v27, %v289_v29  ;;  %v335_v34 = vmul.f32 %v424_v23, %v299_v30 }
 0x210   :  { %v333_v35 = vmul.f32 %v426_v26, %v292_v31 }
 0x211   :  { %v337_v36 = vmul.f32 %v335_v34, %v616_v32 }
 0x212   :  { %v336_v37 = vmul.f32 %v333_v35, %v618_v33 }
 0x213   :  { %v339_v38 = vadd.f32 %v337_v36, %v606_v4 }
 0x214   :  { %v338_v39 = vadd.f32 %v336_v37, %v602_v2 }
 0x215   :  { %341 = vst.msk [vmem:[#allocation8 + $0x8] sm:$0xff] %vm64_vm0, %v339_v38 }
 0x216   :  { %340 = vst.msk [vmem:[#allocation8] sm:$0xff] %vm64_vm0, %v338_v39 }
 0x217   :  { %504 = shalt.err (!%p501_p0)
}
 0x218   :  { %s505_s27 = scalar_lea.hbm %s654_s3, 256 }
 0x219   :  { %p506_p1 = scmp.ne.s32.totalorder %s654_s3, %s505_s27  ;;  %p509_p2 = scmp.lt.u32.totalorder %s505_s27, %s654_s3 }
 0x21b   :  { %p511_p3 = pnand %p509_p2, %p506_p1 }
 0x21d   :  { %514 = shalt.err (!%p511_p3)
}
 0x21e   :  { %353 = dma.vmem_to_hbm [thread:$0]  %s348_s21, 256, %s654_s3, [#allocation4], %s523_s24, %s523_s24, %s524_s25  }
 0x21f   :  { %519 = dma.done.wait [#allocation4], 256  }
 0x220   :  { %520 = vsyncadd [#allocation4], 4294967040 }
 0x221   :  { %357 = vsyncpa [#allocation3], 1 }
 0x222   :  { %358 = vsyncpa [#allocation6], 1 }
 0x223   :  { %359 = vsyncpa [#allocation4], 1 }

</bundles_post_ra>
